<compile_context>
chip_gen: v6e
topology: v6e:2x2x1
jax: 0.10.0
libtpu: 0.0.40
codegen_flags: <defaults>
</compile_context>

<pallas_src>
import functools

import jax
import jax.numpy as jnp
from jax import lax
from jax.experimental import pallas as pl
from jax.experimental.pallas import tpu as pltpu

BN_EPS = 1e-5
LANE = 128


def _round_up(x, m):
    return (x + m - 1) // m * m


def _topk_encoder_kernel(x_ref, w1_ref, g_ref, be_ref, w2_ref, b2_ref, o_ref,
                         sum_ref, sumsq_ref, scale_ref, shift_ref, *, inv_n):
    phase = pl.program_id(0)
    bblk = pl.program_id(1)
    nblk = pl.num_programs(1)

    # Linear-1 on the MXU: bf16 operands (x cast in-kernel), f32 accumulation.
    # Linear-1 bias omitted: training-mode BN subtracts the batch mean, so the
    # bias cancels out of the forward output.
    h = jnp.dot(x_ref[...].astype(jnp.bfloat16), w1_ref[...],
                preferred_element_type=jnp.float32)

    @pl.when(phase == 0)
    def _stats_phase():
        @pl.when(bblk == 0)
        def _init():
            sum_ref[...] = jnp.zeros_like(sum_ref)
            sumsq_ref[...] = jnp.zeros_like(sumsq_ref)

        # Zero-padded batch rows contribute exactly 0 to both sums, so the
        # statistics stay exact as long as we divide by the TRUE batch size.
        sum_ref[...] += jnp.sum(h, axis=0, keepdims=True)
        sumsq_ref[...] += jnp.sum(h * h, axis=0, keepdims=True)

        @pl.when(bblk == nblk - 1)
        def _finalize():
            mean = sum_ref[...] * inv_n
            var = sumsq_ref[...] * inv_n - mean * mean      # biased var (PyTorch BN)
            scale = g_ref[...] * lax.rsqrt(var + BN_EPS)    # EUP rsqrt
            scale_ref[...] = scale
            shift_ref[...] = be_ref[...] - mean * scale

    @pl.when(phase == 1)
    def _apply_phase():
        # Folded BN affine + ReLU (two VPU ops), then Linear-2 on the MXU.
        hh = jnp.maximum(h * scale_ref[...] + shift_ref[...], 0.0)
        o_ref[...] = (jnp.dot(hh.astype(jnp.bfloat16), w2_ref[...],
                              preferred_element_type=jnp.float32) + b2_ref[...])


def topk_encoder_forward(x, params, *, block_b=256):
    """x: (B, topk, out_channel) or (B, topk*out_channel). Returns (B, out_channel) f32.

    If this encoder is called for many independent micro-batches, concatenate
    them along B before calling so a single pallas_call amortizes launch cost
    and feeds full MXU rows.
    """
    out_c = int(params["out_channel"])
    b = x.shape[0]
    x2d = x.reshape(b, -1).astype(jnp.float32)       # free view; bf16 cast happens in-kernel
    k = x2d.shape[1]
    c_pad = params["w1"].shape[1]                    # lane-dense (multiple of 128)

    tb = min(block_b, _round_up(b, 8))               # batch tile (multiple of 8)
    b_pad = _round_up(b, tb)
    if b_pad != b:
        # zero rows contribute nothing to the BN sums; sliced off below
        x2d = jnp.pad(x2d, ((0, b_pad - b), (0, 0)))
    nblk = b_pad // tb

    def vec_spec():
        return pl.BlockSpec((1, c_pad), lambda p, i: (0, 0))

    out = pl.pallas_call(
        functools.partial(_topk_encoder_kernel, inv_n=1.0 / b),
        out_shape=jax.ShapeDtypeStruct((b_pad, c_pad), jnp.float32),
        grid_spec=pltpu.PrefetchScalarGridSpec(
            num_scalar_prefetch=0,
            grid=(2, nblk),                                        # (phase, batch block)
            in_specs=[
                pl.BlockSpec((tb, k), lambda p, i: (i, 0)),        # x  (streamed, both phases)
                pl.BlockSpec((k, c_pad), lambda p, i: (0, 0)),     # w1 (VMEM-resident, bf16)
                vec_spec(),                                        # gamma
                vec_spec(),                                        # beta
                pl.BlockSpec((c_pad, c_pad), lambda p, i: (0, 0)), # w2 (VMEM-resident, bf16)
                vec_spec(),                                        # b2
            ],
            # Phase 0 never stores the output; mapping all phase-0 steps to block 0
            # keeps the output-block sequence consecutive (no wasted HBM writeback).
            out_specs=pl.BlockSpec((tb, c_pad), lambda p, i: (i * p, 0)),
            scratch_shapes=[pltpu.VMEM((1, c_pad), jnp.float32)] * 4,  # sum, sumsq, scale, shift
        ),
        compiler_params=pltpu.CompilerParams(
            # phase axis and the stat-accumulating batch axis are sequential
            dimension_semantics=("arbitrary", "arbitrary"),
            vmem_limit_bytes=32 << 20,
        ),
    )(x2d, params["w1"], params["g"], params["be"], params["w2"], params["b2"])
    return out[:b, :out_c]


def init_topk_encoder_params(key, topk, out_channel):
    """Weights stored (in, out), pre-cast to bf16 and zero-padded to a
    lane-dense (multiple-of-128) channel dim, so nothing is converted per call."""
    in_dim = topk * out_channel
    c_pad = _round_up(out_channel, LANE)
    pad_c = c_pad - out_channel
    k1, k2, k3 = jax.random.split(key, 3)
    s1 = 1.0 / jnp.sqrt(in_dim)
    s2 = 1.0 / jnp.sqrt(out_channel)

    w1 = jax.random.uniform(k1, (in_dim, out_channel), jnp.float32, -s1, s1)
    # Linear-1 bias intentionally not created: it cancels under training-mode BN.
    w2 = jax.random.uniform(k2, (out_channel, out_channel), jnp.float32, -s2, s2)
    b2 = jax.random.uniform(k3, (out_channel,), jnp.float32, -s2, s2)

    return dict(
        out_channel=out_channel,
        w1=jnp.pad(w1, ((0, 0), (0, pad_c))).astype(jnp.bfloat16),
        g=jnp.pad(jnp.ones((out_channel,), jnp.float32), (0, pad_c)).reshape(1, c_pad),
        be=jnp.zeros((1, c_pad), jnp.float32),
        w2=jnp.pad(w2, ((0, pad_c), (0, pad_c))).astype(jnp.bfloat16),
        b2=jnp.pad(b2, (0, pad_c)).reshape(1, c_pad),
    )


def _reference_forward(x, params, out_c):
    """Pure-JAX reference (bf16-rounded matmul inputs to match the kernel)."""
    b = x.shape[0]
    xb = x.reshape(b, -1).astype(jnp.bfloat16).astype(jnp.float32)
    w1 = params["w1"].astype(jnp.float32)[:, :out_c]
    w2 = params["w2"].astype(jnp.float32)[:out_c, :out_c]
    g = params["g"][0, :out_c]
    be = params["be"][0, :out_c]
    b2 = params["b2"][0, :out_c]
    h = jnp.dot(xb, w1, precision=lax.Precision.HIGHEST)
    mean = h.mean(axis=0)
    var = h.var(axis=0)                                   # biased, as PyTorch BN
    hh = jnp.maximum((h - mean) * (g / jnp.sqrt(var + BN_EPS)) + be, 0.0)
    hb = hh.astype(jnp.bfloat16).astype(jnp.float32)
    return jnp.dot(hb, w2, precision=lax.Precision.HIGHEST) + b2


if __name__ == "__main__":
    B, TOPK, OUTCH = 16, 4, 32            # K = topk*out_channel = 128 (lane-dense)

    key = jax.random.PRNGKey(0)
    kx, kp = jax.random.split(key)

    x = jax.random.normal(kx, (B, TOPK, OUTCH), jnp.float32)
    params = init_topk_encoder_params(kp, TOPK, OUTCH)

    fwd = jax.jit(lambda xx: topk_encoder_forward(xx, params))
    out = fwd(x)
    jax.block_until_ready(out)

    assert out.shape == (B, OUTCH) and out.dtype == jnp.float32
    assert bool(jnp.all(jnp.isfinite(out)))
    ref = _reference_forward(x, params, OUTCH)
    assert bool(jnp.allclose(out, ref, atol=1e-2, rtol=1e-2)), "mismatch vs JAX reference"
    print("KERNEL_OK")
</pallas_src>

<mosaic_0001>
module attributes {stable_mosaic.version = 11 : i64} {
  func.func @_topk_encoder_kernel(%arg0: i32, %arg1: i32, %arg2: memref<16x128xf32, #tpu.memory_space<vmem>>, %arg3: memref<128x128xbf16, #tpu.memory_space<vmem>>, %arg4: memref<1x128xf32, #tpu.memory_space<vmem>>, %arg5: memref<1x128xf32, #tpu.memory_space<vmem>>, %arg6: memref<128x128xbf16, #tpu.memory_space<vmem>>, %arg7: memref<1x128xf32, #tpu.memory_space<vmem>>, %arg8: memref<16x128xf32, #tpu.memory_space<vmem>>, %arg9: memref<1x128xf32, #tpu.memory_space<vmem>>, %arg10: memref<1x128xf32, #tpu.memory_space<vmem>>, %arg11: memref<1x128xf32, #tpu.memory_space<vmem>>, %arg12: memref<1x128xf32, #tpu.memory_space<vmem>>) attributes {dimension_semantics = [#tpu.dimension_semantics<arbitrary>, #tpu.dimension_semantics<arbitrary>], iteration_bounds = array<i64: 2, 1>, scalar_prefetch = 0 : i64, scratch_operands = 4 : i64, tpu.core_type = #tpu.core_type<tc>, window_params = [{transform_indices = @transform_0, window_bounds = array<i64: 16, 128>}, {pipeline_mode = #tpu.pipeline_mode<synchronous>, transform_indices = @transform_1, window_bounds = array<i64: 128, 128>}, {pipeline_mode = #tpu.pipeline_mode<synchronous>, transform_indices = @transform_2, window_bounds = array<i64: 1, 128>}, {pipeline_mode = #tpu.pipeline_mode<synchronous>, transform_indices = @transform_3, window_bounds = array<i64: 1, 128>}, {pipeline_mode = #tpu.pipeline_mode<synchronous>, transform_indices = @transform_4, window_bounds = array<i64: 128, 128>}, {pipeline_mode = #tpu.pipeline_mode<synchronous>, transform_indices = @transform_5, window_bounds = array<i64: 1, 128>}, {transform_indices = @transform_6, window_bounds = array<i64: 16, 128>}]} {
    %c0 = arith.constant 0 : index
    %c0_0 = arith.constant 0 : index
    %0 = vector.load %arg2[%c0, %c0_0] : memref<16x128xf32, #tpu.memory_space<vmem>>, vector<16x128xf32>
    %1 = arith.truncf %0 : vector<16x128xf32> to vector<16x128xbf16>
    %c0_1 = arith.constant 0 : index
    %c0_2 = arith.constant 0 : index
    %2 = vector.load %arg3[%c0_1, %c0_2] : memref<128x128xbf16, #tpu.memory_space<vmem>>, vector<128x128xbf16>
    %cst = arith.constant dense<0.000000e+00> : vector<16x128xf32>
    %3 = tpu.matmul %1, %2, %cst {dimension_numbers = #tpu.dot_dimension_numbers<[1], [0], [0], [1], [0, 0, 1, 1], [], []>} : vector<16x128xbf16>, vector<128x128xbf16>, vector<16x128xf32> -> vector<16x128xf32>
    %c0_i32 = arith.constant 0 : i32
    %4 = arith.cmpi eq, %arg0, %c0_i32 : i32
    %5 = arith.extui %4 : i1 to i32
    %c0_i32_3 = arith.constant 0 : i32
    %6 = arith.cmpi ne, %5, %c0_i32_3 : i32
    scf.if %6 {
      %c0_i32_5 = arith.constant 0 : i32
      %10 = arith.cmpi eq, %arg1, %c0_i32_5 : i32
      %11 = arith.extui %10 : i1 to i32
      %c0_i32_6 = arith.constant 0 : i32
      %12 = arith.cmpi ne, %11, %c0_i32_6 : i32
      scf.if %12 {
        %cst_19 = arith.constant 0.000000e+00 : f32
        %27 = vector.broadcast %cst_19 : f32 to vector<1x128xf32>
        %c0_20 = arith.constant 0 : index
        %c0_21 = arith.constant 0 : index
        %28 = vector.load %arg9[%c0_20, %c0_21] : memref<1x128xf32, #tpu.memory_space<vmem>>, vector<1x128xf32>
        tpu.vector_store %arg9[%c0_20, %c0_21], %27 {strides = array<i32>} : memref<1x128xf32, #tpu.memory_space<vmem>>, vector<1x128xf32>,
        %cst_22 = arith.constant 0.000000e+00 : f32
        %29 = vector.broadcast %cst_22 : f32 to vector<1x128xf32>
        %c0_23 = arith.constant 0 : index
        %c0_24 = arith.constant 0 : index
        %30 = vector.load %arg10[%c0_23, %c0_24] : memref<1x128xf32, #tpu.memory_space<vmem>>, vector<1x128xf32>
        tpu.vector_store %arg10[%c0_23, %c0_24], %29 {strides = array<i32>} : memref<1x128xf32, #tpu.memory_space<vmem>>, vector<1x128xf32>,
      } else {
      }
      %c0_7 = arith.constant 0 : index
      %c0_8 = arith.constant 0 : index
      %13 = vector.load %arg9[%c0_7, %c0_8] : memref<1x128xf32, #tpu.memory_space<vmem>>, vector<1x128xf32>
      %cst_9 = arith.constant dense<0.000000e+00> : vector<128xf32>
      %14 = vector.multi_reduction <add>, %3, %cst_9 [0] : vector<16x128xf32> to vector<128xf32>
      %15 = vector.shape_cast %14 : vector<128xf32> to vector<1x128xf32>
      %16 = arith.addf %13, %15 : vector<1x128xf32>
      %c0_10 = arith.constant 0 : index
      %c0_11 = arith.constant 0 : index
      %17 = vector.load %arg9[%c0_10, %c0_11] : memref<1x128xf32, #tpu.memory_space<vmem>>, vector<1x128xf32>
      tpu.vector_store %arg9[%c0_10, %c0_11], %16 {strides = array<i32>} : memref<1x128xf32, #tpu.memory_space<vmem>>, vector<1x128xf32>,
      %c0_12 = arith.constant 0 : index
      %c0_13 = arith.constant 0 : index
      %18 = vector.load %arg10[%c0_12, %c0_13] : memref<1x128xf32, #tpu.memory_space<vmem>>, vector<1x128xf32>
      %19 = arith.mulf %3, %3 : vector<16x128xf32>
      %cst_14 = arith.constant dense<0.000000e+00> : vector<128xf32>
      %20 = vector.multi_reduction <add>, %19, %cst_14 [0] : vector<16x128xf32> to vector<128xf32>
      %21 = vector.shape_cast %20 : vector<128xf32> to vector<1x128xf32>
      %22 = arith.addf %18, %21 : vector<1x128xf32>
      %c0_15 = arith.constant 0 : index
      %c0_16 = arith.constant 0 : index
      %23 = vector.load %arg10[%c0_15, %c0_16] : memref<1x128xf32, #tpu.memory_space<vmem>>, vector<1x128xf32>
      tpu.vector_store %arg10[%c0_15, %c0_16], %22 {strides = array<i32>} : memref<1x128xf32, #tpu.memory_space<vmem>>, vector<1x128xf32>,
      %c0_i32_17 = arith.constant 0 : i32
      %24 = arith.cmpi eq, %arg1, %c0_i32_17 : i32
      %25 = arith.extui %24 : i1 to i32
      %c0_i32_18 = arith.constant 0 : i32
      %26 = arith.cmpi ne, %25, %c0_i32_18 : i32
      scf.if %26 {
        %c0_19 = arith.constant 0 : index
        %c0_20 = arith.constant 0 : index
        %27 = vector.load %arg9[%c0_19, %c0_20] : memref<1x128xf32, #tpu.memory_space<vmem>>, vector<1x128xf32>
        %cst_21 = arith.constant 6.250000e-02 : f32
        %28 = vector.broadcast %cst_21 : f32 to vector<1x128xf32>
        %29 = arith.mulf %27, %28 : vector<1x128xf32>
        %c0_22 = arith.constant 0 : index
        %c0_23 = arith.constant 0 : index
        %30 = vector.load %arg10[%c0_22, %c0_23] : memref<1x128xf32, #tpu.memory_space<vmem>>, vector<1x128xf32>
        %cst_24 = arith.constant 6.250000e-02 : f32
        %31 = vector.broadcast %cst_24 : f32 to vector<1x128xf32>
        %32 = arith.mulf %30, %31 : vector<1x128xf32>
        %33 = arith.mulf %29, %29 : vector<1x128xf32>
        %34 = arith.subf %32, %33 : vector<1x128xf32>
        %c0_25 = arith.constant 0 : index
        %c0_26 = arith.constant 0 : index
        %35 = vector.load %arg4[%c0_25, %c0_26] : memref<1x128xf32, #tpu.memory_space<vmem>>, vector<1x128xf32>
        %cst_27 = arith.constant 9.99999974E-6 : f32
        %36 = vector.broadcast %cst_27 : f32 to vector<1x128xf32>
        %37 = arith.addf %34, %36 : vector<1x128xf32>
        %38 = math.rsqrt %37 : vector<1x128xf32>
        %39 = arith.mulf %35, %38 : vector<1x128xf32>
        %c0_28 = arith.constant 0 : index
        %c0_29 = arith.constant 0 : index
        %40 = vector.load %arg11[%c0_28, %c0_29] : memref<1x128xf32, #tpu.memory_space<vmem>>, vector<1x128xf32>
        tpu.vector_store %arg11[%c0_28, %c0_29], %39 {strides = array<i32>} : memref<1x128xf32, #tpu.memory_space<vmem>>, vector<1x128xf32>,
        %c0_30 = arith.constant 0 : index
        %c0_31 = arith.constant 0 : index
        %41 = vector.load %arg5[%c0_30, %c0_31] : memref<1x128xf32, #tpu.memory_space<vmem>>, vector<1x128xf32>
        %42 = arith.mulf %29, %39 : vector<1x128xf32>
        %43 = arith.subf %41, %42 : vector<1x128xf32>
        %c0_32 = arith.constant 0 : index
        %c0_33 = arith.constant 0 : index
        %44 = vector.load %arg12[%c0_32, %c0_33] : memref<1x128xf32, #tpu.memory_space<vmem>>, vector<1x128xf32>
        tpu.vector_store %arg12[%c0_32, %c0_33], %43 {strides = array<i32>} : memref<1x128xf32, #tpu.memory_space<vmem>>, vector<1x128xf32>,
      } else {
      }
    } else {
    }
    %c1_i32 = arith.constant 1 : i32
    %7 = arith.cmpi eq, %arg0, %c1_i32 : i32
    %8 = arith.extui %7 : i1 to i32
    %c0_i32_4 = arith.constant 0 : i32
    %9 = arith.cmpi ne, %8, %c0_i32_4 : i32
    scf.if %9 {
      %c0_5 = arith.constant 0 : index
      %c0_6 = arith.constant 0 : index
      %10 = vector.load %arg11[%c0_5, %c0_6] : memref<1x128xf32, #tpu.memory_space<vmem>>, vector<1x128xf32>
      %11 = vector.broadcast %10 : vector<1x128xf32> to vector<16x128xf32>
      %12 = arith.mulf %3, %11 : vector<16x128xf32>
      %c0_7 = arith.constant 0 : index
      %c0_8 = arith.constant 0 : index
      %13 = vector.load %arg12[%c0_7, %c0_8] : memref<1x128xf32, #tpu.memory_space<vmem>>, vector<1x128xf32>
      %14 = vector.broadcast %13 : vector<1x128xf32> to vector<16x128xf32>
      %15 = arith.addf %12, %14 : vector<16x128xf32>
      %cst_9 = arith.constant 0.000000e+00 : f32
      %16 = vector.broadcast %cst_9 : f32 to vector<16x128xf32>
      %17 = arith.maximumf %15, %16 : vector<16x128xf32>
      %18 = arith.truncf %17 : vector<16x128xf32> to vector<16x128xbf16>
      %c0_10 = arith.constant 0 : index
      %c0_11 = arith.constant 0 : index
      %19 = vector.load %arg6[%c0_10, %c0_11] : memref<128x128xbf16, #tpu.memory_space<vmem>>, vector<128x128xbf16>
      %cst_12 = arith.constant dense<0.000000e+00> : vector<16x128xf32>
      %20 = tpu.matmul %18, %19, %cst_12 {dimension_numbers = #tpu.dot_dimension_numbers<[1], [0], [0], [1], [0, 0, 1, 1], [], []>} : vector<16x128xbf16>, vector<128x128xbf16>, vector<16x128xf32> -> vector<16x128xf32>
      %c0_13 = arith.constant 0 : index
      %c0_14 = arith.constant 0 : index
      %21 = vector.load %arg7[%c0_13, %c0_14] : memref<1x128xf32, #tpu.memory_space<vmem>>, vector<1x128xf32>
      %22 = vector.broadcast %21 : vector<1x128xf32> to vector<16x128xf32>
      %23 = arith.addf %20, %22 : vector<16x128xf32>
      %c0_15 = arith.constant 0 : index
      %c0_16 = arith.constant 0 : index
      %24 = vector.load %arg8[%c0_15, %c0_16] : memref<16x128xf32, #tpu.memory_space<vmem>>, vector<16x128xf32>
      tpu.vector_store %arg8[%c0_15, %c0_16], %23 {strides = array<i32>} : memref<16x128xf32, #tpu.memory_space<vmem>>, vector<16x128xf32>,
    } else {
    }
    return
  }
  func.func @transform_0(%arg0: i32, %arg1: i32) -> (i32, i32) {
    %c0_i32 = arith.constant 0 : i32
    %c0_i32_0 = arith.constant 0 : i32
    return %arg1, %c0_i32 : i32, i32
  }
  func.func @transform_1(%arg0: i32, %arg1: i32) -> (i32, i32) {
    %c0_i32 = arith.constant 0 : i32
    %c0_i32_0 = arith.constant 0 : i32
    %c0_i32_1 = arith.constant 0 : i32
    return %c0_i32, %c0_i32_0 : i32, i32
  }
  func.func @transform_2(%arg0: i32, %arg1: i32) -> (i32, i32) {
    %c0_i32 = arith.constant 0 : i32
    %c0_i32_0 = arith.constant 0 : i32
    %c0_i32_1 = arith.constant 0 : i32
    return %c0_i32, %c0_i32_0 : i32, i32
  }
  func.func @transform_3(%arg0: i32, %arg1: i32) -> (i32, i32) {
    %c0_i32 = arith.constant 0 : i32
    %c0_i32_0 = arith.constant 0 : i32
    %c0_i32_1 = arith.constant 0 : i32
    return %c0_i32, %c0_i32_0 : i32, i32
  }
  func.func @transform_4(%arg0: i32, %arg1: i32) -> (i32, i32) {
    %c0_i32 = arith.constant 0 : i32
    %c0_i32_0 = arith.constant 0 : i32
    %c0_i32_1 = arith.constant 0 : i32
    return %c0_i32, %c0_i32_0 : i32, i32
  }
  func.func @transform_5(%arg0: i32, %arg1: i32) -> (i32, i32) {
    %c0_i32 = arith.constant 0 : i32
    %c0_i32_0 = arith.constant 0 : i32
    %c0_i32_1 = arith.constant 0 : i32
    return %c0_i32, %c0_i32_0 : i32, i32
  }
  func.func @transform_6(%arg0: i32, %arg1: i32) -> (i32, i32) {
    %0 = arith.muli %arg1, %arg0 : i32
    %c0_i32 = arith.constant 0 : i32
    %c0_i32_0 = arith.constant 0 : i32
    return %0, %c0_i32 : i32, i32
  }
}

</mosaic_0001>

<bundles_post_ra>
// kernel: _lambda_.1
= control target key start
LH: loop header
LB: loop body
LE: loop exit
PB: predicated region body
PF: predicated region fallthrough
CT: control target
= control target key end

     0   :  { %11 = vsyncpa [#allocation7], 0  ;;  %s1096_s0 = inlined_call_operand.vmem [shape: f32[16,128], index: 0, kind: input, shape index: {}]   ;;  %s1097_s1 = inlined_call_operand.hbm [shape: bf16[128,128], index: 1, kind: input, shape index: {}]   ;;  %s1098_s2 = inlined_call_operand.vmem [shape: f32[1,128], index: 2, kind: input, shape index: {}]   ;;  %s1099_s3 = inlined_call_operand.vmem [shape: f32[1,128], index: 3, kind: input, shape index: {}]   ;;  %s1100_s4 = inlined_call_operand.vmem [shape: bf16[128,128], index: 4, kind: input, shape index: {}]   ;;  %s1101_s5 = inlined_call_operand.vmem [shape: f32[1,128], index: 5, kind: input, shape index: {}]   ;;  %s1102_s6 = inlined_call_operand.hbm [shape: f32[16,128], index: 6, kind: output, shape index: {}]  }
   0x1   :  { %12 = vsyncpa [#allocation8], 0 }
   0x2   :  { %14 = vsyncpa [#allocation8 + $0x1], 0  ;;  %s973_s21 = smov 0   ;;  %s975_s22 = smov 0  }
   0x3   :  { %s977_s23 = smov 0  }
   0x4 LB: > { %s681_s24 = sadd.s32 4294967295, %s925_s23   ;;  %s682_s25 = sadd.s32 4294967294, %s925_s23   ;;  %s925_s23 = sphi %s977_s23, %s20_s23   ;;  %s921_s22 = sphi %s975_s22, %s1107_s22   ;;  %s917_s21 = sphi %s973_s21, %s1106_s21  }
   0x5   : > { %s32_s26 = sadd.s32 1, %s921_s22  ;;  %p683_p0 = scmp.ge.s32.totalorder %s925_s23, 1 }
   0x6   : > { %p34_p1 = scmp.ge.s32.totalorder %s32_s26, 2  ;;  %p196_p2 = scmp.lt.s32.totalorder %s925_s23, 3 }
   0x7   : > { %p995_p3 = scmp.eq.s32.totalorder %s681_s24, 0  ;;  %s927_s29 = smov [#allocation6]  }
   0x8   : > { %s1109_s26 = smov (%p34_p1, %s32_s26), 0  ;;  %p1001_p4 = pnand %p683_p0, %p196_p2 }
   0x9   : > { %s217_s30 = sshll.u32 %s927_s29, 4  ;;  %s218_s30 = int_to_ptr.vmem [resolvable:$true] %s217_s30 }
   0xa   : > { %p779_p5 = pneg %p1001_p4  ;;  %s856_s7 = scalar_lea.vmem %s218_s30, 1024 }
   0xb   : > { %p857_p8 = scmp.ne.s32.totalorder %s218_s30, %s856_s7  ;;  %p864_p11 = scmp.lt.s32.totalorder %s218_s30, %s218_s30 }
   0xc   : > { %p780_p6 = pnand %p995_p3, %p779_p5  ;;  %p865_p12 = scmp.lt.s32.totalorder %s856_s7, %s856_s7 }
   0xe   : > { %p847_p7 = pneg %p780_p6  ;;  %p866_p13 = por %p865_p12, %p864_p11 }
  0x10   : > { %p859_p9 = pnand %p857_p8, %p847_p7 }
  0x12   : > { %p860_p10 = pneg %p859_p9 }
  0x14   : > { %p867_p0 = pnand %p866_p13, %p860_p10 }
  0x16   : > { %870 = shalt.err (!%p867_p0)
}
  0x17   : > { %s928_s8 = smov 64   ;;  %s929_s9 = smov 4  }
  0x18   : > { %782 = dma.hbm_to_vmem [thread:$0]  (!%p780_p6), %s1097_s1, 1024, %s218_s30, [#allocation7], %s928_s8, %s928_s8, %s929_s9  }
  0x19   : > { %245 = sbr.rel (%p1001_p4) target bundleno = 570 (0x23a), region = 44 }
  0x1e   : > { %908 = dma.done.wait (%p995_p3), [#allocation7], 1024  }
  0x1f   : > { %910 = vsyncadd (%p995_p3), [#allocation7], 4294966272  ;;  %v930_v0 = vmov 0.0   ;;  %vm931_vm0 = vmmov 0   ;;  %v827_v1 = vld [vmem:[#allocation6 + $0x38] sm:$0xff]   ;;  %v828_v2 = vld [vmem:[#allocation6 + $0x30] sm:$0xff]  }
  0x20   : > { %731 = vmatprep.subr.bf16.mxu0 %v930_v0  ;;  %747 = vmatprep.mubr.msk.bf16.mxu0 %vm931_vm0, %v930_v0  ;;  %v829_v3 = vld [vmem:[#allocation6 + $0x28] sm:$0xff]   ;;  %v830_v4 = vld [vmem:[#allocation6 + $0x20] sm:$0xff]   ;;  %v831_v5 = vld [vmem:[#allocation6 + $0x18] sm:$0xff]   ;;  %p696_p1 = scmp.ne.s32.totalorder %s917_s21, 0 }
  0x21   : > { %732 = vmatpush3.bf16.msra.mxu0 %v827_v1  ;;  %v832_v6 = vld [vmem:[#allocation6 + $0x10] sm:$0xff]   ;;  %v833_v7 = vld [vmem:[#allocation6 + $0x8] sm:$0xff]   ;;  %v834_v8 = vld [vmem:[#allocation6] sm:$0xff]  }
  0x22   : > { %733 = vmatprep.subr.bf16.mxu0 %v930_v0  ;;  %v284_v9 = vld [vmem:[%s1096_s0] sm:$0xff]  ;;  %v285_v10 = vld [vmem:[%s1096_s0 + $0x8] sm:$0xff] }
  0x23   : > { %v286_v11 = vpack.c.bf16 %v285_v10, %v284_v9 }
  0x25   : > { %734 = vmatpush3.bf16.msra.mxu0 %v828_v2 }
  0x26   : > { %735 = vmatprep.subr.bf16.mxu0 %v930_v0 }
  0x29   : > { %736 = vmatpush3.bf16.msra.mxu0 %v829_v3 }
  0x2a   : > { %737 = vmatprep.subr.bf16.mxu0 %v930_v0 }
  0x2d   : > { %738 = vmatpush3.bf16.msra.mxu0 %v830_v4 }
  0x2e   : > { %739 = vmatprep.subr.bf16.mxu0 %v930_v0 }
  0x31   : > { %740 = vmatpush3.bf16.msra.mxu0 %v831_v5 }
  0x32   : > { %741 = vmatprep.subr.bf16.mxu0 %v930_v0 }
  0x35   : > { %742 = vmatpush3.bf16.msra.mxu0 %v832_v6 }
  0x36   : > { %743 = vmatprep.subr.bf16.mxu0 %v930_v0 }
  0x39   : > { %744 = vmatpush3.bf16.msra.mxu0 %v833_v7 }
  0x3a   : > { %745 = vmatprep.subr.bf16.mxu0 %v930_v0 }
  0x3d   : > { %746 = vmatpush3.bf16.msra.mxu0 %v834_v8 }
  0x40   : > { %748 = vmatmul.mubr.bf16.vlgmr.msra.gmra.mxu0 %v286_v11 }
 0x100   : > { %v1024_v12 = vpop.f32.mrf.mxu0 }
 0x102   : > { %v749_v13 = vpop.f32.mrf.mxu0  ;;  %395 = sbr.rel (%p696_p1) target bundleno = 316 (0x13c), region = 52 }
 0x104   : > { %v1026_v14 = vpop.f32.mrf.mxu0 }
 0x106   : > { %v750_v15 = vpop.f32.mrf.mxu0 }
 0x107   : > { %v403_v16 = vadd.f32 %v1026_v14, %v1024_v12  ;;  %v413_v17 = vmul.f32 %v1024_v12, %v1024_v12  ;;  %v414_v18 = vmul.f32 %v1026_v14, %v1026_v14  ;;  %v932_v19 = vmov 0.0   ;;  %v433_v44 = vld [vmem:[%s1098_s2] sm:$0x1] }
 0x108   : > { %400 = vst [vmem:[#allocation2] sm:$0x1] %v932_v19  ;;  %401 = vst [vmem:[#allocation3] sm:$0x1] %v932_v19  ;;  %v438_v47 = vld [vmem:[%s1099_s3] sm:$0x1] }
 0x109   : > { %v404_v20 = vrot.slane %v403_v16, 4  ;;  %v415_v21 = vadd.f32 %v414_v18, %v413_v17 }
 0x10b   : > { %v405_v22 = vadd.f32 %v404_v20, %v403_v16  ;;  %v416_v23 = vrot.slane %v415_v21, 4 }
 0x10d   : > { %v406_v24 = vrot.slane %v405_v22, 2  ;;  %v417_v25 = vadd.f32 %v416_v23, %v415_v21 }
 0x10f   : > { %v407_v26 = vadd.f32 %v406_v24, %v405_v22  ;;  %v418_v27 = vrot.slane %v417_v25, 2  ;;  %v402_v30 = vld [vmem:[#allocation2] sm:$0x1]  ;;  %v412_v33 = vld [vmem:[#allocation3] sm:$0x1] }
 0x111   : > { %v408_v28 = vrot.slane %v407_v26, 1  ;;  %v419_v29 = vadd.f32 %v418_v27, %v417_v25 }
 0x113   : > { %v409_v31 = vadd.f32 %v408_v28, %v407_v26  ;;  %v420_v32 = vrot.slane %v419_v29, 1 }
 0x115   : > { %v410_v34 = vadd.f32 %v409_v31, %v402_v30  ;;  %v421_v35 = vadd.f32 %v420_v32, %v419_v29 }
 0x117   : > { %411 = vst [vmem:[#allocation2] sm:$0x1] %v410_v34  ;;  %v422_v36 = vadd.f32 %v421_v35, %v412_v33 }
 0x119   : > { %423 = vst [vmem:[#allocation3] sm:$0x1] %v422_v36 }
 0x11e   : > { %v427_v37 = vld [vmem:[#allocation2] sm:$0x1] }
 0x11f   : > { %v428_v38 = vmul.f32 0.0625, %v427_v37 }
 0x120   : > { %v429_v39 = vld [vmem:[#allocation3] sm:$0x1] }
 0x121   : > { %v430_v40 = vmul.f32 0.0625, %v429_v39  ;;  %v431_v41 = vmul.f32 %v428_v38, %v428_v38 }
 0x123   : > { %v432_v42 = vsub.f32 %v430_v40, %v431_v41 }
 0x125   : > { %v434_v43 = vadd.f32 1e-05, %v432_v42 }
 0x127   : > { %835 = vrsqrt.f32 %v434_v43 }
 0x134   : > { %v836_v45 = vpop.eup %835 }
 0x135   : > { %v436_v46 = vmul.f32 %v836_v45, %v433_v44 }
 0x137   : > { %437 = vst [vmem:[#allocation4] sm:$0x1] %v436_v46  ;;  %v439_v48 = vmul.f32 %v436_v46, %v428_v38 }
 0x139   : > { %v440_v49 = vsub.f32 %v438_v47, %v439_v48 }
 0x13b   : > { %441 = vst [vmem:[#allocation5] sm:$0x1] %v440_v49 }
 0x13c PF: > { %p697_p2 = scmp.ne.s32.totalorder %s917_s21, 1 }
 0x13e   : > { %445 = sbr.rel (%p697_p2) target bundleno = 556 (0x22c), region = 64 }
 0x143   : > { %v837_v50 = vld [vmem:[%s1100_s4 + $0x38] sm:$0xff]   ;;  %v933_v51 = vmov 0.0   ;;  %v838_v52 = vld [vmem:[%s1100_s4 + $0x30] sm:$0xff]   ;;  %vm934_vm1 = vmmov 0   ;;  %v839_v53 = vld [vmem:[%s1100_s4 + $0x28] sm:$0xff]  }
 0x144   : > { %751 = vmatprep.subr.bf16.mxu0 %v933_v51  ;;  %767 = vmatprep.mubr.msk.bf16.mxu0 %vm934_vm1, %v933_v51  ;;  %v840_v54 = vld [vmem:[%s1100_s4 + $0x20] sm:$0xff]   ;;  %v841_v55 = vld [vmem:[%s1100_s4 + $0x18] sm:$0xff]   ;;  %v842_v59 = vld [vmem:[%s1100_s4 + $0x10] sm:$0xff]  }
 0x145   : > { %752 = vmatpush3.bf16.msra.mxu0 %v837_v50  ;;  %v698_v56 = vld [vmem:[#allocation4] ss:$0 sm:$0xff]  ;;  %v699_v60 = vld [vmem:[#allocation5] ss:$0 sm:$0xff]  ;;  %v843_v63 = vld [vmem:[%s1100_s4 + $0x8] sm:$0xff]  }
 0x146   : > { %753 = vmatprep.subr.bf16.mxu0 %v933_v51  ;;  %v453_v57 = vmul.f32 %v698_v56, %v1024_v12  ;;  %v454_v58 = vmul.f32 %v698_v56, %v1026_v14  ;;  %v844_v2 = vld [vmem:[%s1100_s4] sm:$0xff]  }
 0x147   : > { %v700_v4 = vld [vmem:[%s1101_s5] ss:$0 sm:$0xff] }
 0x148   : > { %v462_v61 = vadd.f32 %v699_v60, %v453_v57  ;;  %v463_v62 = vadd.f32 %v699_v60, %v454_v58 }
 0x149   : > { %754 = vmatpush3.bf16.msra.mxu0 %v838_v52 }
 0x14a   : > { %755 = vmatprep.subr.bf16.mxu0 %v933_v51  ;;  %v464_v0 = vmax.f32 %v462_v61, 0.0  ;;  %v465_v1 = vmax.f32 %v463_v62, 0.0 }
 0x14c   : > { %v466_v3 = vpack.c.bf16 %v465_v1, %v464_v0 }
 0x14d   : > { %756 = vmatpush3.bf16.msra.mxu0 %v839_v53 }
 0x14e   : > { %757 = vmatprep.subr.bf16.mxu0 %v933_v51 }
 0x151   : > { %758 = vmatpush3.bf16.msra.mxu0 %v840_v54 }
 0x152   : > { %759 = vmatprep.subr.bf16.mxu0 %v933_v51 }
 0x155   : > { %760 = vmatpush3.bf16.msra.mxu0 %v841_v55 }
 0x156   : > { %761 = vmatprep.subr.bf16.mxu0 %v933_v51 }
 0x159   : > { %762 = vmatpush3.bf16.msra.mxu0 %v842_v59 }
 0x15a   : > { %763 = vmatprep.subr.bf16.mxu0 %v933_v51 }
 0x15d   : > { %764 = vmatpush3.bf16.msra.mxu0 %v843_v63 }
 0x15e   : > { %765 = vmatprep.subr.bf16.mxu0 %v933_v51 }
 0x161   : > { %766 = vmatpush3.bf16.msra.mxu0 %v844_v2 }
 0x164   : > { %768 = vmatmul.mubr.bf16.vlgmr.msra.gmra.mxu0 %v466_v3 }
 0x224   : > { %v572_v5 = vpop.f32.mrf.mxu0 }
 0x225   : > { %v573_v6 = vadd.f32 %v700_v4, %v572_v5 }
 0x226   : > { %v769_v7 = vpop.f32.mrf.mxu0 }
 0x227   : > { %579 = vst [vmem:[#allocation9] sm:$0xff] %v573_v6 }
 0x228   : > { %v575_v8 = vpop.f32.mrf.mxu0 }
 0x229   : > { %v576_v9 = vadd.f32 %v700_v4, %v575_v8 }
 0x22a   : > { %v770_v10 = vpop.f32.mrf.mxu0 }
 0x22b   : > { %580 = vst [vmem:[#allocation9 + $0x8] sm:$0xff] %v576_v9 }
 0x22c PF: > { %p1073_p3 = scmp.eq.s32.totalorder %s681_s24, 1  ;;  %s935_s20 = smov [#allocation9]  }
 0x22d   : > { %s596_s27 = sshll.u32 %s935_s20, 4  ;;  %s597_s27 = int_to_ptr.vmem [resolvable:$true] %s596_s27 }
 0x22e   : > { %s871_s28 = scalar_lea.vmem %s597_s27, 256  ;;  %s877_s29 = scalar_lea.vmem %s597_s27, 512 }
 0x22f   : > { %p872_p4 = scmp.ne.s32.totalorder %s597_s27, %s871_s28  ;;  %p878_p7 = scmp.lt.s32.totalorder %s597_s27, %s597_s27 }
 0x230   : > { %p879_p8 = scmp.lt.s32.totalorder %s877_s29, %s871_s28 }
 0x231   : > { %p873_p5 = pnand %p872_p4, %p1073_p3 }
 0x232   : > { %p880_p9 = por %p879_p8, %p878_p7 }
 0x233   : > { %p874_p6 = pneg %p873_p5 }
 0x235   : > { %p881_p10 = pnand %p880_p9, %p874_p6 }
 0x237   : > { %884 = shalt.err (!%p881_p10)
}
 0x238   : > { %s936_s30 = smov 128   ;;  %s937_s24 = smov 8  }
 0x239   : > { %776 = dma.vmem_to_hbm [thread:$0]  (%p1073_p3), %s597_s27, 256, %s1102_s6, [#allocation8], %s936_s30, %s936_s30, %s937_s24  }
 0x23a PF: > { %p790_p11 = scmp.ge.s32.totalorder %s925_s23, 2  ;;  %p791_p12 = scmp.eq.s32.totalorder %s682_s25, 1 }
 0x23c   : > { %p784_p13 = pnand %p791_p12, %p790_p11 }
 0x23e   : > { %p785_p0 = pneg %p784_p13 }
 0x240   : > { %912 = dma.done.wait (%p785_p0), [#allocation8], 256  }
 0x241   : > { %914 = vsyncadd (%p785_p0), [#allocation8], 4294967040  ;;  %s20_s23 = sadd.s32 1, %s925_s23   ;;  %s1106_s21 = smov %s921_s22 }
 0x242   : > { %p17_p1 = scmp.ge.s32.totalorder %s20_s23, 4   ;;  %s1107_s22 = smov %s1109_s26 }
 0x244   :  { %19 = sbr.rel (!%p17_p1) target bundleno = 4 (0x4), region = 100 }
 0x249   :  { %617 = vsyncpa [#allocation7], 1 }
 0x24a   :  { %619 = vsyncpa [#allocation7 + $0x1], 1 }
 0x24b   :  { %620 = vsyncpa [#allocation8], 1 }
 0x24c   :  { %622 = vsyncpa [#allocation8 + $0x1], 1 }

</bundles_post_ra>
